<compile_context>
chip_gen: v5e
topology: v5e:2x2
jax: 0.10.0
libtpu: 0.0.40
codegen_flags: <defaults>
</compile_context>

<pallas_src>
import math
import functools

import jax
import jax.numpy as jnp
from jax import lax
from jax.experimental import pallas as pl
from jax.experimental.pallas import tpu as pltpu

CONSTANT = 1e-05


def _round_up(x: int, m: int) -> int:
    return ((x + m - 1) // m) * m


def _make_window(name, n):
    """torch.*_window(N, periodic=False) equivalents."""
    i = jnp.arange(n, dtype=jnp.float32)
    if name == 'hamming':
        return 0.54 - 0.46 * jnp.cos(2.0 * jnp.pi * i / (n - 1))
    if name == 'hann':
        return 0.5 - 0.5 * jnp.cos(2.0 * jnp.pi * i / (n - 1))
    if name == 'bartlett':
        return 1.0 - jnp.abs(2.0 * i / (n - 1) - 1.0)
    if name == 'blackman':
        w = 2.0 * jnp.pi * i / (n - 1)
        return 0.42 - 0.5 * jnp.cos(w) + 0.08 * jnp.cos(2.0 * w)
    return jnp.ones((n,), jnp.float32)          # 'none' / unknown


# ----------------------------- Pallas kernel --------------------------------
def _spec_kernel(seq_ref, frames_ref, basis_ref, o_ref, *,
                 n_freq, half, nf_pad, tile_t, log, packed):
    """One (batch, time-tile) block per grid step.

    seq_ref    : SMEM (B,) int32          -- valid frame count per batch
    frames_ref : VMEM (1, tile_t, n_fft)  -- framed (un-windowed) audio (bf16)
    basis_ref  : VMEM (n_rows, n_fft)     -- fused window*DFT basis (bf16)
    o_ref      : VMEM (1, n_freq, tile_t) -- log-magnitude spectrogram (f32)
    """
    b = pl.program_id(0)
    j = pl.program_id(1)

    frames = frames_ref[0]                                # (tile_t, n_fft)

    # Single MXU call, flash-attn style A @ B^T: contract the n_fft axis of
    # BOTH operands -> (n_rows, tile_t). No transposed frame tensor in HBM.
    s = lax.dot_general(basis_ref[...], frames,
                        dimension_numbers=(((1,), (1,)), ((), ())),
                        preferred_element_type=jnp.float32)
    sq = s * s                                            # (n_rows, tile_t)

    def _mag(power):
        # Matches the reference exactly: log(sqrt(power) + 1e-20).
        m = jnp.sqrt(power)
        return jnp.log(m + 1e-20) if log else m

    if packed:
        # Packed basis layout (n_rows == n_fft):
        #   rows [0, half)      : cos_f * w   for f = 0 .. half-1
        #   row  half           : cos_Nyquist * w
        #   rows (half, n_fft)  : -sin_f * w  for f = 1 .. half-1
        top = sq[0:half, :]                   # Re^2 for f = 0 .. half-1
        bot = sq[half:2 * half, :]            # row0 = Re^2(Nyq); rows 1.. = Im^2
        row = lax.broadcasted_iota(jnp.int32, (half, tile_t), 0)
        vals_low = _mag(top + jnp.where(row >= 1, bot, 0.0))   # f = 0..half-1
        vals_nyq = _mag(bot[0:1, :])                           # f = half
    else:
        # Padded fallback layout: rows [0, n_freq) = cos*w,
        # rows [nf_pad, nf_pad+n_freq) = -sin*w (nf_pad multiple of 8).
        vals_low = _mag(sq[0:n_freq, :] + sq[nf_pad:nf_pad + n_freq, :])
        vals_nyq = None

    seq = seq_ref[b]
    tile_end = (j + 1) * tile_t

    @pl.when(seq >= tile_end)                 # fully-valid tile: skip the mask
    def _():
        if packed:
            o_ref[0, 0:half, :] = vals_low
            o_ref[0, half:n_freq, :] = vals_nyq
        else:
            o_ref[0] = vals_low

    @pl.when(seq < tile_end)                  # zero frames >= seq_len[b]
    def _():
        t_idx = j * tile_t + lax.broadcasted_iota(jnp.int32, (1, tile_t), 1)
        valid = t_idx < seq
        if packed:
            o_ref[0, 0:half, :] = jnp.where(valid, vals_low, 0.0)
            o_ref[0, half:n_freq, :] = jnp.where(valid, vals_nyq, 0.0)
        else:
            o_ref[0] = jnp.where(valid, vals_low, 0.0)


# ------------------------------ Module wrapper -------------------------------
class SpectrogramFeaturesPallas:
    def __init__(self, sample_rate=8000, window_size=0.02, window_stride=0.01,
                 n_fft=None, window='hamming', normalize=True, log=True,
                 center=True, dither=CONSTANT, pad_to=8, frame_splicing=1,
                 compute_dtype=jnp.bfloat16):
        self.win_length = int(sample_rate * window_size)
        self.hop_length = int(sample_rate * window_stride)
        self.n_fft = n_fft or 2 ** math.ceil(math.log2(self.win_length))
        self.n_freq = self.n_fft // 2 + 1
        self.normalize = normalize
        self.log = log
        self.center = center
        self.dither = dither
        self.pad_to = pad_to
        self.frame_splicing = frame_splicing
        self.compute_dtype = compute_dtype   # bf16 operands, f32 accumulation

        # Window centered inside n_fft (torch.stft behavior for win_length < n_fft).
        win = _make_window(window, self.win_length)
        pad_l = (self.n_fft - self.win_length) // 2
        win_full = jnp.zeros((self.n_fft,), jnp.float32).at[
            pad_l:pad_l + self.win_length].set(win)
        self.win_full = win_full

        half = self.n_fft // 2
        self.half = half
        # Packed basis needs an even n_fft and a sublane-aligned half-point.
        self.packed = (self.n_fft % 2 == 0) and (half % 8 == 0)

        f = jnp.arange(self.n_freq, dtype=jnp.float32)[:, None]
        k = jnp.arange(self.n_fft, dtype=jnp.float32)[None, :]
        ang = 2.0 * jnp.pi * f * k / float(self.n_fft)
        cosb = jnp.cos(ang) * win_full[None, :]     # (n_freq, n_fft)
        sinb = -jnp.sin(ang) * win_full[None, :]

        if self.packed:
            # Exactly n_fft rows (256 for defaults): one full MXU weight pass
            # on v6e/v7x, two full 128-wide passes on v5e. Uses Im(0)=Im(Nyq)=0.
            self.nf_pad = 0
            basis = jnp.zeros((self.n_fft, self.n_fft), jnp.float32)
            basis = basis.at[0:half].set(cosb[0:half])              # cos f<half
            basis = basis.at[half].set(cosb[half])                  # cos Nyquist
            basis = basis.at[half + 1:2 * half].set(sinb[1:half])   # -sin 1..half-1
        else:
            self.nf_pad = _round_up(self.n_freq, 8)
            basis = jnp.zeros((2 * self.nf_pad, self.n_fft), jnp.float32)
            basis = basis.at[0:self.n_freq].set(cosb)
            basis = basis.at[self.nf_pad:self.nf_pad + self.n_freq].set(sinb)
        self.basis = basis.astype(self.compute_dtype)

    def get_seq_len(self, seq_len):
        return jnp.ceil(seq_len.astype(jnp.float32) / self.hop_length).astype(jnp.int32)

    def __call__(self, x, seq_len, *, dither_key=None):
        orig_dtype = x.dtype
        x = x.astype(jnp.float32)
        B, T = x.shape
        seq_len_frames = self.get_seq_len(seq_len)

        if self.dither > 0:
            # TODO(synk): reference draws fresh noise each forward; pass a new
            # dither_key per call (or draw in-kernel with pltpu.prng_*) to match.
            key = dither_key if dither_key is not None else jax.random.PRNGKey(42)
            x = x + self.dither * jax.random.normal(key, x.shape, jnp.float32)

        # torch.stft(center=True) -> reflect pad by n_fft//2 on both sides.
        if self.center:
            half_fft = self.n_fft // 2
            x_pad = jnp.pad(x, ((0, 0), (half_fft, half_fft)), mode='reflect')
            n_frames = 1 + T // self.hop_length
        else:
            x_pad = x
            n_frames = 1 + (T - self.n_fft) // self.hop_length

        # Reference pads the frame axis to a multiple of pad_to with zeros.
        t_out = _round_up(n_frames, self.pad_to) if self.pad_to > 0 else n_frames

        # Lane-dense time tiling: multiple of 128 for unmasked vector stores,
        # up to 1024 frames per grid step (per-step VMEM stays ~2.3 MB).
        tile_t = 128
        for cand in (1024, 512, 256):
            if t_out >= 4 * cand:
                tile_t = cand
                break
        t_round = _round_up(t_out, tile_t)
        n_t_tiles = t_round // tile_t

        # Framing (glue), chunk-based: frame t = x_pad[t*hop : t*hop + n_fft]
        # == flatten(chunks[t : t + n_per])[:n_fft] with hop-sized chunks.
        # Row-granular gather with a small (t_round, n_per) index array
        # (instead of (t_round, n_fft) element indices), gathered in bf16.
        # TODO(synk): framing could move fully in-kernel (manual DMA of raw
        # audio spans) to cut frame-read amplification (n_fft/hop) to ~1x.
        hop, n_fft = self.hop_length, self.n_fft
        n_per = (n_fft - 1) // hop + 1
        n_chunks = t_round + n_per
        need = n_chunks * hop
        pad_amt = max(0, need - x_pad.shape[1])
        x_ext = jnp.pad(x_pad, ((0, 0), (0, pad_amt)))[:, :need]
        chunks = x_ext.reshape(B, n_chunks, hop).astype(self.compute_dtype)
        cidx = (jnp.arange(t_round, dtype=jnp.int32)[:, None]
                + jnp.arange(n_per, dtype=jnp.int32)[None, :])     # (t_round, n_per)
        frames = chunks[:, cidx].reshape(B, t_round, n_per * hop)[:, :, :n_fft]

        # frame_splicing == 1 (default) -> no-op.
        # TODO(synk): frame_splicing > 1 (splice_frames) not implemented.
        # normalize=True (a bool) hits the reference's else branch -> no-op.
        # TODO(synk): string normalize modes ('per_feature'/'all_features') not implemented.

        n_rows = self.basis.shape[0]
        kernel = functools.partial(
            _spec_kernel, n_freq=self.n_freq, half=self.half,
            nf_pad=self.nf_pad, tile_t=tile_t, log=self.log, packed=self.packed)

        out = pl.pallas_call(
            kernel,
            out_shape=jax.ShapeDtypeStruct((B, self.n_freq, t_round), jnp.float32),
            grid_spec=pltpu.PrefetchScalarGridSpec(
                num_scalar_prefetch=1,
                grid=(B, n_t_tiles),
                in_specs=[
                    pl.BlockSpec((1, tile_t, n_fft),
                                 lambda b, j, seq: (b, j, 0)),
                    pl.BlockSpec((n_rows, n_fft),
                                 lambda b, j, seq: (0, 0)),
                ],
                out_specs=pl.BlockSpec((1, self.n_freq, tile_t),
                                       lambda b, j, seq: (b, 0, j)),
            ),
            compiler_params=pltpu.CompilerParams(
                dimension_semantics=("parallel", "parallel"),
                vmem_limit_bytes=32 * 1024 * 1024),
        )(seq_len_frames, frames, self.basis)

        if t_round != t_out:
            out = out[:, :, :t_out]
        # TODO(synk): emit bf16 directly from the kernel when the downstream
        # consumer is bf16 (halves the output store stream); f32 kept to match
        # the reference dtype flow (x.to(dtype) with f32 input).
        return out.astype(orig_dtype)


# ----------------------------------- main ------------------------------------
if __name__ == "__main__":
    key = jax.random.PRNGKey(0)
    k_audio, k_dither = jax.random.split(key)

    B, T = 2, 800                                  # audio samples (small)
    x = jax.random.normal(k_audio, (B, T), dtype=jnp.float32)
    seq_len = jnp.array([800, 560], dtype=jnp.int32)   # valid samples per batch

    module = SpectrogramFeaturesPallas()           # 8 kHz, 20ms/10ms, hamming, bf16 compute
    out = module(x, seq_len, dither_key=k_dither)
    out = jax.block_until_ready(out)

    # expected shape: (B, n_fft//2+1, frame count padded to pad_to)
    n_frames = 1 + T // module.hop_length
    t_out = _round_up(n_frames, module.pad_to)
    assert out.shape == (B, module.n_freq, t_out), out.shape
    assert bool(jnp.all(jnp.isfinite(out)))

    # frames at/after seq_len must be zero (mask applied in-kernel)
    slf = module.get_seq_len(seq_len)
    assert bool(jnp.all(out[0, :, int(slf[0]):] == 0.0))
    assert bool(jnp.all(out[1, :, int(slf[1]):] == 0.0))

    # numeric sanity vs a pure-JAX STFT reference (same dither noise / window)
    x_d = x + module.dither * jax.random.normal(k_dither, x.shape, jnp.float32)
    hf = module.n_fft // 2
    x_pad = jnp.pad(x_d, ((0, 0), (hf, hf)), mode='reflect')
    idx = (jnp.arange(n_frames)[:, None] * module.hop_length
           + jnp.arange(module.n_fft)[None, :])
    ref_frames = x_pad[:, idx] * module.win_full[None, None, :]
    ref_mag = jnp.swapaxes(jnp.abs(jnp.fft.rfft(ref_frames, axis=-1)), 1, 2)
    kern_mag = jnp.exp(out.astype(jnp.float32))      # invert log(|X| + 1e-20)
    for b in range(B):
        nb = int(slf[b])
        a, r = kern_mag[b, :, :nb], ref_mag[b, :, :nb]
        rel = float(jnp.linalg.norm(a - r) / jnp.linalg.norm(r))
        assert rel < 0.05, rel

    print("KERNEL_OK")
</pallas_src>

<mosaic_0001>
module attributes {stable_mosaic.version = 11 : i64} {
  func.func @_spec_kernel(%arg0: i32, %arg1: i32, %arg2: memref<2xi32, #tpu.memory_space<smem>>, %arg3: memref<1x128x256xbf16, #tpu.memory_space<vmem>>, %arg4: memref<256x256xbf16, #tpu.memory_space<vmem>>, %arg5: memref<1x129x128xf32, #tpu.memory_space<vmem>>) attributes {dimension_semantics = [#tpu.dimension_semantics<parallel>, #tpu.dimension_semantics<parallel>], iteration_bounds = array<i64: 2, 1>, scalar_prefetch = 1 : i64, scratch_operands = 0 : i64, tpu.core_type = #tpu.core_type<tc>, window_params = [{transform_indices = @transform_0, window_bounds = array<i64: 1, 128, 256>}, {pipeline_mode = #tpu.pipeline_mode<synchronous>, transform_indices = @transform_1, window_bounds = array<i64: 256, 256>}, {transform_indices = @transform_2, window_bounds = array<i64: 1, 129, 128>}]} {
    %c0 = arith.constant 0 : index
    %c0_0 = arith.constant 0 : index
    %c0_1 = arith.constant 0 : index
    %0 = vector.load %arg3[%c0, %c0_0, %c0_1] : memref<1x128x256xbf16, #tpu.memory_space<vmem>>, vector<1x128x256xbf16>
    %1 = vector.shape_cast %0 : vector<1x128x256xbf16> to vector<128x256xbf16>
    %c0_2 = arith.constant 0 : index
    %c0_3 = arith.constant 0 : index
    %2 = vector.load %arg4[%c0_2, %c0_3] : memref<256x256xbf16, #tpu.memory_space<vmem>>, vector<256x256xbf16>
    %cst = arith.constant dense<0.000000e+00> : vector<256x128xf32>
    %3 = tpu.matmul %2, %1, %cst {dimension_numbers = #tpu.dot_dimension_numbers<[1], [1], [0], [0], [0, 0, 1, 0], [], []>} : vector<256x256xbf16>, vector<128x256xbf16>, vector<256x128xf32> -> vector<256x128xf32>
    %4 = arith.mulf %3, %3 : vector<256x128xf32>
    %5 = vector.extract_strided_slice %4 {offsets = [0, 0], sizes = [128, 128], strides = [1, 1]} : vector<256x128xf32> to vector<128x128xf32>
    %6 = vector.extract_strided_slice %4 {offsets = [128, 0], sizes = [128, 128], strides = [1, 1]} : vector<256x128xf32> to vector<128x128xf32>
    %7 = tpu.iota {dimensions = array<i32: 0>} : vector<128x128xi32>
    %c1_i32 = arith.constant 1 : i32
    %8 = vector.broadcast %c1_i32 : i32 to vector<128x128xi32>
    %9 = arith.cmpi sge, %7, %8 : vector<128x128xi32>
    %cst_4 = arith.constant 0.000000e+00 : f32
    %10 = vector.broadcast %cst_4 : f32 to vector<128x128xf32>
    %11 = arith.select %9, %6, %10 : vector<128x128xi1>, vector<128x128xf32>
    %12 = arith.addf %5, %11 : vector<128x128xf32>
    %13 = math.sqrt %12 : vector<128x128xf32>
    %cst_5 = arith.constant 9.99999968E-21 : f32
    %14 = vector.broadcast %cst_5 : f32 to vector<128x128xf32>
    %15 = arith.addf %13, %14 : vector<128x128xf32>
    %16 = math.log %15 : vector<128x128xf32>
    %17 = vector.extract_strided_slice %6 {offsets = [0, 0], sizes = [1, 128], strides = [1, 1]} : vector<128x128xf32> to vector<1x128xf32>
    %18 = math.sqrt %17 : vector<1x128xf32>
    %cst_6 = arith.constant 9.99999968E-21 : f32
    %19 = vector.broadcast %cst_6 : f32 to vector<1x128xf32>
    %20 = arith.addf %18, %19 : vector<1x128xf32>
    %21 = math.log %20 : vector<1x128xf32>
    %22 = arith.index_cast %arg0 : i32 to index
    %23 = memref.load %arg2[%22] : memref<2xi32, #tpu.memory_space<smem>>
    %c1_i32_7 = arith.constant 1 : i32
    %24 = arith.addi %arg1, %c1_i32_7 : i32
    %c128_i32 = arith.constant 128 : i32
    %25 = arith.muli %24, %c128_i32 : i32
    %26 = arith.cmpi sge, %23, %25 : i32
    %27 = arith.extui %26 : i1 to i32
    %c0_i32 = arith.constant 0 : i32
    %28 = arith.cmpi ne, %27, %c0_i32 : i32
    scf.if %28 {
      %c0_9 = arith.constant 0 : index
      %c0_10 = arith.constant 0 : index
      %c0_11 = arith.constant 0 : index
      %32 = vector.load %arg5[%c0_9, %c0_10, %c0_11] : memref<1x129x128xf32, #tpu.memory_space<vmem>>, vector<1x128x128xf32>
      %33 = vector.shape_cast %32 : vector<1x128x128xf32> to vector<128x128xf32>
      %34 = vector.shape_cast %16 : vector<128x128xf32> to vector<1x128x128xf32>
      tpu.vector_store %arg5[%c0_9, %c0_10, %c0_11], %34 {strides = array<i32>} : memref<1x129x128xf32, #tpu.memory_space<vmem>>, vector<1x128x128xf32>,
      %c0_12 = arith.constant 0 : index
      %c128 = arith.constant 128 : index
      %c0_13 = arith.constant 0 : index
      %35 = vector.load %arg5[%c0_12, %c128, %c0_13] : memref<1x129x128xf32, #tpu.memory_space<vmem>>, vector<1x1x128xf32>
      %36 = vector.shape_cast %35 : vector<1x1x128xf32> to vector<1x128xf32>
      %37 = vector.shape_cast %21 : vector<1x128xf32> to vector<1x1x128xf32>
      tpu.vector_store %arg5[%c0_12, %c128, %c0_13], %37 {strides = array<i32>} : memref<1x129x128xf32, #tpu.memory_space<vmem>>, vector<1x1x128xf32>,
    } else {
    }
    %29 = arith.cmpi slt, %23, %25 : i32
    %30 = arith.extui %29 : i1 to i32
    %c0_i32_8 = arith.constant 0 : i32
    %31 = arith.cmpi ne, %30, %c0_i32_8 : i32
    scf.if %31 {
      %c128_i32_9 = arith.constant 128 : i32
      %32 = arith.muli %arg1, %c128_i32_9 : i32
      %33 = tpu.iota {dimensions = array<i32: 1>} : vector<1x128xi32>
      %34 = vector.broadcast %32 : i32 to vector<1x128xi32>
      %35 = arith.addi %34, %33 : vector<1x128xi32>
      %36 = vector.broadcast %23 : i32 to vector<1x128xi32>
      %37 = arith.cmpi slt, %35, %36 : vector<1x128xi32>
      %cst_10 = arith.constant 0.000000e+00 : f32
      %38 = vector.shape_cast %37 : vector<1x128xi1> to vector<1x128xi1>
      %39 = vector.broadcast %38 : vector<1x128xi1> to vector<128x128xi1>
      %40 = vector.broadcast %cst_10 : f32 to vector<128x128xf32>
      %41 = arith.select %39, %16, %40 : vector<128x128xi1>, vector<128x128xf32>
      %c0_11 = arith.constant 0 : index
      %c0_12 = arith.constant 0 : index
      %c0_13 = arith.constant 0 : index
      %42 = vector.load %arg5[%c0_11, %c0_12, %c0_13] : memref<1x129x128xf32, #tpu.memory_space<vmem>>, vector<1x128x128xf32>
      %43 = vector.shape_cast %42 : vector<1x128x128xf32> to vector<128x128xf32>
      %44 = vector.shape_cast %41 : vector<128x128xf32> to vector<1x128x128xf32>
      tpu.vector_store %arg5[%c0_11, %c0_12, %c0_13], %44 {strides = array<i32>} : memref<1x129x128xf32, #tpu.memory_space<vmem>>, vector<1x128x128xf32>,
      %cst_14 = arith.constant 0.000000e+00 : f32
      %45 = vector.broadcast %cst_14 : f32 to vector<1x128xf32>
      %46 = arith.select %37, %21, %45 : vector<1x128xi1>, vector<1x128xf32>
      %c0_15 = arith.constant 0 : index
      %c128 = arith.constant 128 : index
      %c0_16 = arith.constant 0 : index
      %47 = vector.load %arg5[%c0_15, %c128, %c0_16] : memref<1x129x128xf32, #tpu.memory_space<vmem>>, vector<1x1x128xf32>
      %48 = vector.shape_cast %47 : vector<1x1x128xf32> to vector<1x128xf32>
      %49 = vector.shape_cast %46 : vector<1x128xf32> to vector<1x1x128xf32>
      tpu.vector_store %arg5[%c0_15, %c128, %c0_16], %49 {strides = array<i32>} : memref<1x129x128xf32, #tpu.memory_space<vmem>>, vector<1x1x128xf32>,
    } else {
    }
    return
  }
  func.func @transform_0(%arg0: i32, %arg1: i32, %arg2: memref<2xi32, #tpu.memory_space<smem>>) -> (i32, i32, i32) {
    %c0_i32 = arith.constant 0 : i32
    %c0_i32_0 = arith.constant 0 : i32
    return %arg0, %arg1, %c0_i32 : i32, i32, i32
  }
  func.func @transform_1(%arg0: i32, %arg1: i32, %arg2: memref<2xi32, #tpu.memory_space<smem>>) -> (i32, i32) {
    %c0_i32 = arith.constant 0 : i32
    %c0_i32_0 = arith.constant 0 : i32
    %c0_i32_1 = arith.constant 0 : i32
    return %c0_i32, %c0_i32_0 : i32, i32
  }
  func.func @transform_2(%arg0: i32, %arg1: i32, %arg2: memref<2xi32, #tpu.memory_space<smem>>) -> (i32, i32, i32) {
    %c0_i32 = arith.constant 0 : i32
    %c0_i32_0 = arith.constant 0 : i32
    return %arg0, %c0_i32, %arg1 : i32, i32, i32
  }
}

</mosaic_0001>

<bundles_post_ra>
// kernel: tpu_custom_call.1
= control target key start
LH: loop header
LB: loop body
LE: loop exit
PB: predicated region body
PF: predicated region fallthrough
CT: control target
= control target key end

     0   :  { %s1750_s15 = smov [#allocation3]   ;;  %s2181_s0 = inlined_call_operand.hbm [shape: s32[2], index: 0, kind: input, shape index: {}]   ;;  %s2182_s1 = inlined_call_operand.hbm [shape: bf16[2,128,256], index: 1, kind: input, shape index: {}]   ;;  %s2183_s2 = inlined_call_operand.hbm [shape: bf16[256,256], index: 2, kind: input, shape index: {}]   ;;  %s2184_s3 = inlined_call_operand.vmem [shape: f32[2,129,128], index: 3, kind: output, shape index: {}]  }
   0x1   :  { %s9_s14 = sshll.u32 %s2181_s0, 4  ;;  %s10_s14 = int_to_ptr.hbm [resolvable:$true] %s9_s14 }
   0x2   :  { %12 = dma.hbm_to_smem %s10_s14, 16, %s1750_s15, [#allocation2] }
   0x3   :  { %1716 = dma.done.wait [#allocation2], 16 }
   0x4   :  { %1717 = vsyncadd [#allocation2], 4294967280 }
   0x5   :  { %15 = sfence }
   0x6   :  { %16 = vsyncpa [#allocation5], 0 }
   0x7   :  { %18 = vsyncpa [#allocation5 + $0x1], 0 }
   0x8   :  { %19 = vsyncpa [#allocation7], 0  ;;  %s1777_s16 = smov 0   ;;  %s1779_s17 = smov 0  }
   0x9   :  { %s1781_s18 = smov 0   ;;  %s1783_s19 = smov 0  }
   0xa   :  { %s1785_s20 = smov 0   ;;  %s1787_s0 = smov 0  }
   0xb LB: > { %s1209_s21 = sadd.s32 4294967295, %s1748_s0   ;;  %p59_p0 = scmp.ne.s32.totalorder %s1732_s17, %s1728_s16  ;;  %s1748_s0 = sphi %s1787_s0, %s25_s0   ;;  %s1744_s20 = sphi %s1785_s20, %s2195_s20   ;;  %s1740_s19 = sphi %s1783_s19, %s2194_s19   ;;  %s1736_s18 = sphi %s1781_s18, %s2193_s18   ;;  %s1732_s17 = sphi %s1779_s17, %s2192_s17   ;;  %s1728_s16 = sphi %s1777_s16, %s2191_s16  }
   0xc   : > { %p1807_p1 = scmp.eq.s32.totalorder %s1209_s21, 0  ;;  %p1211_p2 = scmp.ge.s32.totalorder %s1748_s0, 1 }
   0xd   : > { %p119_p3 = scmp.lt.s32.totalorder %s1748_s0, 3  ;;  %s130_s26 = sshll.u32 %s2183_s2, 4  ;;  %s131_s26 = int_to_ptr.hbm [resolvable:$true] %s130_s26 }
   0xe   : > { %p1815_p4 = por %p1807_p1, %p59_p0  ;;  %s1751_s28 = smov [#allocation6]  }
   0xf   : > { %p1822_p5 = pnand %p1211_p2, %p119_p3  ;;  %s132_s29 = sshll.u32 %s1751_s28, 4  ;;  %s133_s29 = int_to_ptr.vmem [resolvable:$true] %s132_s29 }
  0x10   : > { %s1752_s30 = smov 128   ;;  %s1753_s4 = smov 8  }
  0x11   : > { %p1489_p6 = pneg %p1822_p5  ;;  %s37_s5 = sadd.s32 1, %s1744_s20 }
  0x12   : > { %p39_p8 = scmp.ge.s32.totalorder %s37_s5, 2  ;;  %p53_p9 = scmp.ne.s32.totalorder %s1736_s18, %s1732_s17 }
  0x13   : > { %p1490_p7 = pnand %p1489_p6, %p1807_p1  ;;  %p54_p10 = scmp.eq.s32.totalorder %s1748_s0, 0 }
  0x14   : > { %s2197_s5 = smov (%p39_p8, %s37_s5), 0  ;;  %s46_s6 = sadd.s32 1, %s1736_s18 }
  0x15   : > { %1492 = dma.hbm_to_vmem [thread:$0]  (!%p1490_p7), %s131_s26, 4096, %s133_s29, [#allocation7], %s1752_s30, %s1752_s30, %s1753_s4  }
  0x16   : > { %p1837_p11 = por %p54_p10, %p53_p9  ;;  %s41_s8 = ssub.s32 %s1744_s20, %s2197_s5 }
  0x17   : > { %s146_s9 = sand.u32 1, %s1736_s18   ;;  %p44_p12 = scmp.eq.s32.totalorder %s41_s8, 0 }
  0x18   : > { %p1498_p13 = scmp.lt.s32.totalorder %s1748_s0, 2  ;;  %s1214_s10 = sshll.u32 %s146_s9, 7 }
  0x19   : > { %s1417_s11 = sshll.u32 %s1744_s20, 7  ;;  %s150_s21 = scalar_lea.vmem [#allocation4], %s1214_s10 }
  0x1a   : > { %s1847_s12 = scalar_select %p44_p12, %s1736_s18, %s46_s6  }
  0x1b   : > { %s158_s15 = scalar_lea.hbm %s2182_s1, %s1417_s11  ;;  %s161_s24 = sshll.u32 %s150_s21, 4  ;;  %s162_s24 = int_to_ptr.vmem [resolvable:$true] %s161_s24 }
  0x1c   : > { %s159_s16 = sshll.u32 %s158_s15, 4  ;;  %p1494_p0 = pnand %p1498_p13, %p1837_p11  ;;  %s160_s16 = int_to_ptr.hbm [resolvable:$true] %s159_s16 }
  0x1d   : > { %s147_s25 = scalar_lea.sflag [#allocation5], %s146_s9  ;;  %173 = sbr.rel (%p1822_p5) target bundleno = 440 (0x1b8), region = 28 }
  0x1e   : > { %1496 = dma.hbm_to_vmem [thread:$0]  (!%p1494_p0), %s160_s16, 2048, %s162_s24, %s147_s25, %s1752_s30, %s1752_s30, %s1753_s4  }
  0x1f   : > { %s175_s26 = sand.u32 (!%p1822_p5), 1, %s1732_s17  }
  0x20   : > { %s1218_s28 = sshll.u32 (!%p1822_p5), %s175_s26, 7  ;;  %s176_s29 = scalar_lea.sflag (!%p1822_p5), [#allocation5], %s175_s26 }
  0x21   : > { %s1857_s6 = scalar_lea.vmem (!%p1822_p5), [#allocation4], %s1218_s28 }
  0x22   : > { %1719 = dma.done.wait (%p1815_p4), %s176_s29, 2048  }
  0x23   : > { %1721 = vsyncadd (%p1815_p4), %s176_s29, 4294965248 }
  0x24   : > { %1723 = dma.done.wait (%p1807_p1), [#allocation7], 4096  }
  0x25   : > { %1725 = vsyncadd (%p1807_p1), [#allocation7], 4294963200  ;;  %p210_p2 = scmp.lt.s32.totalorder %s1740_s19, 1  ;;  %s1869_s27 = sld [smem:[#allocation3 + %s1740_s19]]  ;;  %v1407_v0 = vld [vmem:[%s1857_s6 + $0x70] sm:$0xf] }
  0x26   : > { %v1433_v1 = vld [vmem:[%s1857_s6 + $0x74] sm:$0xf0]  ;;  %v1432_v2 = vld [vmem:[%s1857_s6 + $0x74] sm:$0xf]  ;;  %v1409_v4 = vld [vmem:[%s1857_s6 + $0x78] sm:$0xf0] }
  0x27   : > { %s2199_s19 = smov (!%p210_p2, %s1740_s19), 1  ;;  %v1408_v3 = vor.u32 %v1433_v1, %v1407_v0  ;;  %v1412_v5 = vor.u32 %v1432_v2, %v1409_v4  ;;  %v1399_v6 = vld [vmem:[%s1857_s6 + $0x60] sm:$0xf]  ;;  %v1431_v7 = vld [vmem:[%s1857_s6 + $0x64] sm:$0xf0] }
  0x28   : > { %s1482_s23 = smul.u32 136, %s2199_s19  ;;  %v1430_v8 = vld [vmem:[%s1857_s6 + $0x64] sm:$0xf]  ;;  %v1401_v9 = vld [vmem:[%s1857_s6 + $0x68] sm:$0xf0]  ;;  %v1400_v10 = vor.u32 %v1431_v7, %v1399_v6 }
  0x29   : > { %506 = vmatpush.bf16.xpose.msra.mxu0 %v1408_v3  ;;  %1466 = vmatpush.bf16.xpose.msra.mxu2 %v1408_v3  ;;  %v1404_v11 = vor.u32 %v1430_v8, %v1401_v9  ;;  %v1391_v12 = vld [vmem:[%s1857_s6 + $0x50] sm:$0xf]  ;;  %v1429_v13 = vld [vmem:[%s1857_s6 + $0x54] sm:$0xf0]  ;;  %v1428_v14 = vld [vmem:[%s1857_s6 + $0x54] sm:$0xf] }
  0x2a   : > { %s1875_s22 = scalar_lea.vmem %s2184_s3, %s1482_s23  ;;  %595 = vmatpush.bf16.xpose.msra.mxu1 %v1412_v5  ;;  %1474 = vmatpush.bf16.xpose.msra.mxu3 %v1412_v5  ;;  %v1393_v15 = vld [vmem:[%s1857_s6 + $0x58] sm:$0xf0]  ;;  %v1392_v16 = vor.u32 %v1429_v13, %v1391_v12  ;;  %v1383_v18 = vld [vmem:[%s1857_s6 + $0x40] sm:$0xf]  ;;  %v1427_v19 = vld [vmem:[%s1857_s6 + $0x44] sm:$0xf0] }
  0x2b   : > { %v1396_v17 = vor.u32 %v1428_v14, %v1393_v15  ;;  %v1426_v20 = vld [vmem:[%s1857_s6 + $0x44] sm:$0xf]  ;;  %v1385_v21 = vld [vmem:[%s1857_s6 + $0x48] sm:$0xf0]  ;;  %v1384_v22 = vor.u32 %v1427_v19, %v1383_v18  ;;  %v1375_v24 = vld [vmem:[%s1857_s6 + $0x30] sm:$0xf] }
  0x2c   : > { %v1388_v23 = vor.u32 %v1426_v20, %v1385_v21  ;;  %v1425_v25 = vld [vmem:[%s1857_s6 + $0x34] sm:$0xf0]  ;;  %v1424_v26 = vld [vmem:[%s1857_s6 + $0x34] sm:$0xf]  ;;  %v1377_v27 = vld [vmem:[%s1857_s6 + $0x38] sm:$0xf0] }
  0x2d   : > { %v1376_v28 = vor.u32 %v1425_v25, %v1375_v24  ;;  %v1380_v29 = vor.u32 %v1424_v26, %v1377_v27  ;;  %v1367_v30 = vld [vmem:[%s1857_s6 + $0x20] sm:$0xf]  ;;  %v1423_v31 = vld [vmem:[%s1857_s6 + $0x24] sm:$0xf0]  ;;  %v1422_v32 = vld [vmem:[%s1857_s6 + $0x24] sm:$0xf] }
  0x2e   : > { %v1369_v33 = vld [vmem:[%s1857_s6 + $0x28] sm:$0xf0]  ;;  %v1368_v34 = vor.u32 %v1423_v31, %v1367_v30  ;;  %v1359_v36 = vld [vmem:[%s1857_s6 + $0x10] sm:$0xf]  ;;  %v1421_v37 = vld [vmem:[%s1857_s6 + $0x14] sm:$0xf0] }
  0x2f   : > { %v1372_v35 = vor.u32 %v1422_v32, %v1369_v33  ;;  %v1420_v38 = vld [vmem:[%s1857_s6 + $0x14] sm:$0xf]  ;;  %v1361_v39 = vld [vmem:[%s1857_s6 + $0x18] sm:$0xf0]  ;;  %v1360_v40 = vor.u32 %v1421_v37, %v1359_v36  ;;  %v1351_v42 = vld [vmem:[%s1857_s6] sm:$0xf] }
  0x30   : > { %v1364_v41 = vor.u32 %v1420_v38, %v1361_v39  ;;  %v1419_v43 = vld [vmem:[%s1857_s6 + $0x4] sm:$0xf0]  ;;  %v1418_v44 = vld [vmem:[%s1857_s6 + $0x4] sm:$0xf]  ;;  %v1353_v45 = vld [vmem:[%s1857_s6 + $0x8] sm:$0xf0] }
  0x31   : > { %507 = vmatpush.bf16.xpose.msra.mxu0 %v1400_v10  ;;  %1467 = vmatpush.bf16.xpose.msra.mxu2 %v1400_v10  ;;  %v1352_v46 = vor.u32 %v1419_v43, %v1351_v42  ;;  %v1356_v47 = vor.u32 %v1418_v44, %v1353_v45  ;;  %v1223_v48 = vld [vmem:[#allocation6] sm:$0xf]  ;;  %v1435_v49 = vld [vmem:[#allocation6 + $0x4] sm:$0xf0]  ;;  %v1434_v52 = vld [vmem:[#allocation6 + $0x4] sm:$0xf] }
  0x32   : > { %596 = vmatpush.bf16.xpose.msra.mxu1 %v1404_v11  ;;  %1475 = vmatpush.bf16.xpose.msra.mxu3 %v1404_v11  ;;  %v1287_v50 = vld [vmem:[#allocation6 + $0x80] sm:$0xf]  ;;  %v1451_v51 = vld [vmem:[#allocation6 + $0x84] sm:$0xf0]  ;;  %v1225_v53 = vld [vmem:[#allocation6 + $0x8] sm:$0xf0]  ;;  %v1224_v56 = vor.u32 %v1435_v49, %v1223_v48 }
  0x33   : > { %v1450_v54 = vld [vmem:[#allocation6 + $0x84] sm:$0xf]  ;;  %v1289_v55 = vld [vmem:[#allocation6 + $0x88] sm:$0xf0]  ;;  %v1288_v57 = vor.u32 %v1451_v51, %v1287_v50  ;;  %v1228_v58 = vor.u32 %v1434_v52, %v1225_v53  ;;  %v1231_v60 = vld [vmem:[#allocation6 + $0x10] sm:$0xf] }
  0x34   : > { %v1292_v59 = vor.u32 %v1450_v54, %v1289_v55  ;;  %v1437_v61 = vld [vmem:[#allocation6 + $0x14] sm:$0xf0]  ;;  %v1295_v62 = vld [vmem:[#allocation6 + $0x90] sm:$0xf]  ;;  %v1436_v0 = vld [vmem:[#allocation6 + $0x14] sm:$0xf] }
  0x35   : > { %v1453_v63 = vld [vmem:[#allocation6 + $0x94] sm:$0xf0]  ;;  %v1233_v1 = vld [vmem:[#allocation6 + $0x18] sm:$0xf0]  ;;  %v1452_v2 = vld [vmem:[#allocation6 + $0x94] sm:$0xf]  ;;  %v1232_v4 = vor.u32 %v1437_v61, %v1231_v60 }
  0x36   : > { %v1297_v3 = vld [vmem:[#allocation6 + $0x98] sm:$0xf0]  ;;  %v1296_v5 = vor.u32 %v1453_v63, %v1295_v62  ;;  %v1236_v6 = vor.u32 %v1436_v0, %v1233_v1  ;;  %v1239_v8 = vld [vmem:[#allocation6 + $0x20] sm:$0xf]  ;;  %v1439_v9 = vld [vmem:[#allocation6 + $0x24] sm:$0xf0] }
  0x37   : > { %v1300_v7 = vor.u32 %v1452_v2, %v1297_v3  ;;  %v1303_v10 = vld [vmem:[#allocation6 + $0xa0] sm:$0xf]  ;;  %v1455_v11 = vld [vmem:[#allocation6 + $0xa4] sm:$0xf0]  ;;  %v1438_v12 = vld [vmem:[#allocation6 + $0x24] sm:$0xf] }
  0x38   : > { %v1241_v13 = vld [vmem:[#allocation6 + $0x28] sm:$0xf0]  ;;  %v1454_v14 = vld [vmem:[#allocation6 + $0xa4] sm:$0xf]  ;;  %v1247_v20 = vld [vmem:[#allocation6 + $0x30] sm:$0xf] }
  0x39   : > { %508 = vmatpush.bf16.xpose.msra.mxu0 %v1392_v16  ;;  %1468 = vmatpush.bf16.xpose.msra.mxu2 %v1392_v16  ;;  %v1305_v15 = vld [vmem:[#allocation6 + $0xa8] sm:$0xf0]  ;;  %v1240_v16 = vor.u32 %v1439_v9, %v1239_v8  ;;  %v1244_v18 = vor.u32 %v1438_v12, %v1241_v13  ;;  %v1441_v21 = vld [vmem:[#allocation6 + $0x34] sm:$0xf0]  ;;  %v1440_v24 = vld [vmem:[#allocation6 + $0x34] sm:$0xf] }
  0x3a   : > { %597 = vmatpush.bf16.xpose.msra.mxu1 %v1396_v17  ;;  %1476 = vmatpush.bf16.xpose.msra.mxu3 %v1396_v17  ;;  %v1304_v17 = vor.u32 %v1455_v11, %v1303_v10  ;;  %v1308_v19 = vor.u32 %v1454_v14, %v1305_v15  ;;  %v1249_v25 = vld [vmem:[#allocation6 + $0x38] sm:$0xf0]  ;;  %v1456_v26 = vld [vmem:[#allocation6 + $0xb4] sm:$0xf]  ;;  %v1255_v32 = vld [vmem:[#allocation6 + $0x40] sm:$0xf] }
  0x3b   : > { %v1313_v27 = vld [vmem:[#allocation6 + $0xb8] sm:$0xf0]  ;;  %v1252_v30 = vor.u32 %v1440_v24, %v1249_v25  ;;  %v1443_v33 = vld [vmem:[#allocation6 + $0x44] sm:$0xf0]  ;;  %v1442_v36 = vld [vmem:[#allocation6 + $0x44] sm:$0xf] }
  0x3c   : > { %v1316_v31 = vor.u32 %v1456_v26, %v1313_v27  ;;  %v1257_v37 = vld [vmem:[#allocation6 + $0x48] sm:$0xf0]  ;;  %v1458_v38 = vld [vmem:[#allocation6 + $0xc4] sm:$0xf]  ;;  %v1263_v44 = vld [vmem:[#allocation6 + $0x50] sm:$0xf] }
  0x3d   : > { %v1321_v39 = vld [vmem:[#allocation6 + $0xc8] sm:$0xf0]  ;;  %v1260_v42 = vor.u32 %v1442_v36, %v1257_v37  ;;  %v1445_v45 = vld [vmem:[#allocation6 + $0x54] sm:$0xf0]  ;;  %v1444_v48 = vld [vmem:[#allocation6 + $0x54] sm:$0xf] }
  0x3e   : > { %v1324_v43 = vor.u32 %v1458_v38, %v1321_v39  ;;  %v1265_v49 = vld [vmem:[#allocation6 + $0x58] sm:$0xf0]  ;;  %v1460_v50 = vld [vmem:[#allocation6 + $0xd4] sm:$0xf]  ;;  %v1264_v52 = vor.u32 %v1445_v45, %v1263_v44  ;;  %v1446_v60 = vld [vmem:[#allocation6 + $0x64] sm:$0xf] }
  0x3f   : > { %v1329_v51 = vld [vmem:[#allocation6 + $0xd8] sm:$0xf0]  ;;  %v1268_v54 = vor.u32 %v1444_v48, %v1265_v49  ;;  %v1273_v61 = vld [vmem:[#allocation6 + $0x68] sm:$0xf0]  ;;  %v1462_v62 = vld [vmem:[#allocation6 + $0xe4] sm:$0xf] }
  0x40   : > { %v1332_v55 = vor.u32 %v1460_v50, %v1329_v51  ;;  %v1337_v63 = vld [vmem:[#allocation6 + $0xe8] sm:$0xf0]  ;;  %v1276_v2 = vor.u32 %v1446_v60, %v1273_v61  ;;  %v1448_v8 = vld [vmem:[#allocation6 + $0x74] sm:$0xf]  ;;  %v1281_v9 = vld [vmem:[#allocation6 + $0x78] sm:$0xf0] }
  0x41   : > { %509 = vmatpush.bf16.xpose.msra.mxu0 %v1384_v22  ;;  %1469 = vmatpush.bf16.xpose.msra.mxu2 %v1384_v22  ;;  %v1311_v22 = vld [vmem:[#allocation6 + $0xb0] sm:$0xf]  ;;  %v1340_v3 = vor.u32 %v1462_v62, %v1337_v63  ;;  %v1464_v10 = vld [vmem:[#allocation6 + $0xf4] sm:$0xf]  ;;  %v1345_v11 = vld [vmem:[#allocation6 + $0xf8] sm:$0xf0]  ;;  %v1284_v14 = vor.u32 %v1448_v8, %v1281_v9 }
  0x42   : > { %598 = vmatpush.bf16.xpose.msra.mxu1 %v1388_v23  ;;  %1477 = vmatpush.bf16.xpose.msra.mxu3 %v1388_v23  ;;  %v1457_v23 = vld [vmem:[#allocation6 + $0xb4] sm:$0xf0]  ;;  %v1348_v15 = vor.u32 %v1464_v10, %v1345_v11  ;;  %p1413_p1 = scmp.lt.s32.totalorder %s1869_s27, 128 }
  0x49   : > { %510 = vmatpush.bf16.xpose.msra.mxu0 %v1376_v28  ;;  %1470 = vmatpush.bf16.xpose.msra.mxu2 %v1376_v28  ;;  %v1248_v28 = vor.u32 %v1441_v21, %v1247_v20 }
  0x4a   : > { %599 = vmatpush.bf16.xpose.msra.mxu1 %v1380_v29  ;;  %1478 = vmatpush.bf16.xpose.msra.mxu3 %v1380_v29  ;;  %v1312_v29 = vor.u32 %v1457_v23, %v1311_v22 }
  0x51   : > { %511 = vmatpush.bf16.xpose.msra.mxu0 %v1368_v34  ;;  %1471 = vmatpush.bf16.xpose.msra.mxu2 %v1368_v34  ;;  %v1319_v34 = vld [vmem:[#allocation6 + $0xc0] sm:$0xf] }
  0x52   : > { %600 = vmatpush.bf16.xpose.msra.mxu1 %v1372_v35  ;;  %1479 = vmatpush.bf16.xpose.msra.mxu3 %v1372_v35  ;;  %v1459_v35 = vld [vmem:[#allocation6 + $0xc4] sm:$0xf0] }
  0x59   : > { %512 = vmatpush.bf16.xpose.msra.mxu0 %v1360_v40  ;;  %1472 = vmatpush.bf16.xpose.msra.mxu2 %v1360_v40  ;;  %v1256_v40 = vor.u32 %v1443_v33, %v1255_v32 }
  0x5a   : > { %601 = vmatpush.bf16.xpose.msra.mxu1 %v1364_v41  ;;  %1480 = vmatpush.bf16.xpose.msra.mxu3 %v1364_v41  ;;  %v1320_v41 = vor.u32 %v1459_v35, %v1319_v34 }
  0x61   : > { %513 = vmatpush.bf16.xpose.msra.mxu0 %v1352_v46  ;;  %1473 = vmatpush.bf16.xpose.msra.mxu2 %v1352_v46  ;;  %v1327_v46 = vld [vmem:[#allocation6 + $0xd0] sm:$0xf] }
  0x62   : > { %602 = vmatpush.bf16.xpose.msra.mxu1 %v1356_v47  ;;  %1481 = vmatpush.bf16.xpose.msra.mxu3 %v1356_v47  ;;  %v1461_v47 = vld [vmem:[#allocation6 + $0xd4] sm:$0xf0] }
  0x63   : > { %v1328_v53 = vor.u32 %v1461_v47, %v1327_v46 }
  0x68   : > { %514 = vmatmul.bf16.vlgmr.msra.gmra.mxu0 %v1224_v56  ;;  %554 = vmatmul.bf16.vlgmr.msra.gmra.mxu2 %v1288_v57  ;;  %v1271_v56 = vld [vmem:[#allocation6 + $0x60] sm:$0xf]  ;;  %v1447_v57 = vld [vmem:[#allocation6 + $0x64] sm:$0xf0] }
  0x69   : > { %603 = vmatmul.bf16.vlgmr.msra.gmra.mxu1 %v1228_v58  ;;  %643 = vmatmul.bf16.vlgmr.msra.gmra.mxu3 %v1292_v59  ;;  %v1335_v58 = vld [vmem:[#allocation6 + $0xe0] sm:$0xf]  ;;  %v1463_v59 = vld [vmem:[#allocation6 + $0xe4] sm:$0xf0]  ;;  %v1272_v0 = vor.u32 %v1447_v57, %v1271_v56 }
  0x6a   : > { %v1336_v1 = vor.u32 %v1463_v59, %v1335_v58 }
  0x78   : > { %519 = vmatmul.bf16.gmra.mxu0 %v1232_v4  ;;  %559 = vmatmul.bf16.gmra.mxu2 %v1296_v5  ;;  %v1279_v4 = vld [vmem:[#allocation6 + $0x70] sm:$0xf]  ;;  %v1449_v5 = vld [vmem:[#allocation6 + $0x74] sm:$0xf0] }
  0x79   : > { %608 = vmatmul.bf16.gmra.mxu1 %v1236_v6  ;;  %648 = vmatmul.bf16.gmra.mxu3 %v1300_v7  ;;  %v1343_v6 = vld [vmem:[#allocation6 + $0xf0] sm:$0xf]  ;;  %v1465_v7 = vld [vmem:[#allocation6 + $0xf4] sm:$0xf0]  ;;  %v1280_v12 = vor.u32 %v1449_v5, %v1279_v4 }
  0x7a   : > { %v1344_v13 = vor.u32 %v1465_v7, %v1343_v6 }
  0x88   : > { %524 = vmatmul.bf16.gmra.mxu0 %v1240_v16  ;;  %564 = vmatmul.bf16.gmra.mxu2 %v1304_v17 }
  0x89   : > { %613 = vmatmul.bf16.gmra.mxu1 %v1244_v18  ;;  %653 = vmatmul.bf16.gmra.mxu3 %v1308_v19  ;;  %v716_v18 = vlaneseq }
  0x8b   : > { %v717_v20 = vshrl.u32 %v716_v18, 7 }
  0x8d   : > { %vm733_vm0 = vcmp.ge.s32.totalorder %v717_v20, 1 }
  0x98   : > { %529 = vmatmul.bf16.gmra.mxu0 %v1248_v28  ;;  %569 = vmatmul.bf16.gmra.mxu2 %v1312_v29 }
  0x99   : > { %618 = vmatmul.bf16.gmra.mxu1 %v1252_v30  ;;  %658 = vmatmul.bf16.gmra.mxu3 %v1316_v31 }
  0xa8   : > { %534 = vmatmul.bf16.gmra.mxu0 %v1256_v40  ;;  %574 = vmatmul.bf16.gmra.mxu2 %v1320_v41 }
  0xa9   : > { %623 = vmatmul.bf16.gmra.mxu1 %v1260_v42  ;;  %663 = vmatmul.bf16.gmra.mxu3 %v1324_v43 }
  0xb8   : > { %539 = vmatmul.bf16.gmra.mxu0 %v1264_v52  ;;  %579 = vmatmul.bf16.gmra.mxu2 %v1328_v53 }
  0xb9   : > { %628 = vmatmul.bf16.gmra.mxu1 %v1268_v54  ;;  %668 = vmatmul.bf16.gmra.mxu3 %v1332_v55 }
  0xc8   : > { %544 = vmatmul.bf16.gmra.mxu0 %v1272_v0  ;;  %584 = vmatmul.bf16.gmra.mxu2 %v1336_v1 }
  0xc9   : > { %633 = vmatmul.bf16.gmra.mxu1 %v1276_v2  ;;  %673 = vmatmul.bf16.gmra.mxu3 %v1340_v3 }
  0xd8   : > { %549 = vmatmul.bf16.gmra.mxu0 %v1280_v12  ;;  %589 = vmatmul.bf16.gmra.mxu2 %v1344_v13 }
  0xd9   : > { %638 = vmatmul.bf16.gmra.mxu1 %v1284_v14  ;;  %678 = vmatmul.bf16.gmra.mxu3 %v1348_v15 }
  0xe5   : > { %v515_v16 = vpop.f32.mrf.mxu0 }
  0xe6   : > { %v604_v17 = vpop.f32.mrf.mxu1 }
  0xe7   : > { %v605_v19 = vadd.f32 %v604_v17, %v515_v16 }
  0xe9   : > { %v684_v25 = vmul.f32 %v605_v19, %v605_v19 }
  0xeb   : > { %v555_v21 = vpop.f32.mrf.mxu2 }
  0xec   : > { %v644_v22 = vpop.f32.mrf.mxu3 }
  0xed   : > { %v645_v23 = vadd.f32 %v644_v22, %v555_v21  ;;  %v517_v24 = vpop.f32.mrf.mxu0 }
  0xee   : > { %v606_v26 = vpop.f32.mrf.mxu1 }
  0xef   : > { %v700_v27 = vmul.f32 %v645_v23, %v645_v23  ;;  %v607_v28 = vadd.f32 %v606_v26, %v517_v24 }
  0xf1   : > { %v749_v29 = vsel %vm733_vm0, %v700_v27, 0.0  ;;  %1552 = vrsqrt.f32 %v700_v27  ;;  %v685_v37 = vmul.f32 %v607_v28, %v607_v28  ;;  %vm1028_vm1 = vcmp.eq.f32.partialorder %v700_v27, inf }
  0xf2   : > { %v765_v30 = vadd.f32 %v749_v29, %v684_v25  ;;  %v1031_v0 = vand.u32 2147483648, %v700_v27  ;;  %vm1030_vm2 = vcmp.eq.f32.partialorder %v700_v27, 0.0 }
  0xf3   : > { %v557_v31 = vpop.f32.mrf.mxu2 }
  0xf4   : > { %1554 = vrsqrt.f32 %v765_v30  ;;  %v646_v32 = vpop.f32.mrf.mxu3  ;;  %vm788_vm3 = vcmp.eq.f32.partialorder %v765_v30, inf  ;;  %vm790_vm4 = vcmp.eq.f32.partialorder %v765_v30, 0.0  ;;  %v791_v9 = vand.u32 2147483648, %v765_v30 }
  0xf5   : > { %v647_v33 = vadd.f32 %v646_v32, %v557_v31  ;;  %v520_v34 = vpop.f32.mrf.mxu0 }
  0xf6   : > { %v609_v35 = vpop.f32.mrf.mxu1 }
  0xf7   : > { %v1553_v36 = vpop.eup %1552  ;;  %v701_v38 = vmul.f32 %v647_v33, %v647_v33  ;;  %v610_v39 = vadd.f32 %v609_v35, %v520_v34 }
  0xf8   : > { %v1022_v40 = vmul.f32 %v1553_v36, %v700_v27 }
  0xf9   : > { %v1910_v41 = vadd.f32 %v701_v38, %v685_v37  ;;  %v686_v49 = vmul.f32 %v610_v39, %v610_v39 }
  0xfa   : > { %v1555_v42 = vpop.eup %1554  ;;  %v1023_v43 = vmul.f32 %v1553_v36, %v1022_v40 }
  0xfb   : > { %v782_v44 = vmul.f32 %v1555_v42, %v765_v30  ;;  %1556 = vrsqrt.f32 %v1910_v41  ;;  %v560_v45 = vpop.f32.mrf.mxu2  ;;  %vm800_vm5 = vcmp.eq.f32.partialorder %v1910_v41, inf  ;;  %v803_v29 = vand.u32 2147483648, %v1910_v41 }
  0xfc   : > { %v1024_v46 = vmul.f32 0.5, %v1023_v43  ;;  %v649_v47 = vpop.f32.mrf.mxu3  ;;  %vm802_vm6 = vcmp.eq.f32.partialorder %v1910_v41, 0.0 }
  0xfd   : > { %v783_v48 = vmul.f32 %v1555_v42, %v782_v44  ;;  %v650_v50 = vadd.f32 %v649_v47, %v560_v45  ;;  %v522_v51 = vpop.f32.mrf.mxu0 }
  0xfe   : > { %v1025_v52 = vsub.f32 1.5, %v1024_v46  ;;  %v611_v53 = vpop.f32.mrf.mxu1 }
  0xff   : > { %v784_v54 = vmul.f32 0.5, %v783_v48  ;;  %v702_v55 = vmul.f32 %v650_v50, %v650_v50  ;;  %v612_v56 = vadd.f32 %v611_v53, %v522_v51 }
 0x100   : > { %v1026_v57 = vmul.f32 %v1553_v36, %v1025_v52 }
 0x101   : > { %v1557_v58 = vpop.eup %1556  ;;  %v785_v59 = vsub.f32 1.5, %v784_v54  ;;  %v1913_v60 = vadd.f32 %v702_v55, %v686_v49  ;;  %v687_v14 = vmul.f32 %v612_v56, %v612_v56 }
 0x102   : > { %v1027_v61 = vmul.f32 %v1026_v57, %v700_v27  ;;  %v794_v62 = vmul.f32 %v1557_v58, %v1910_v41 }
 0x103   : > { %v786_v63 = vmul.f32 %v1555_v42, %v785_v59  ;;  %1558 = vrsqrt.f32 %v1913_v60  ;;  %v562_v1 = vpop.f32.mrf.mxu2  ;;  %vm812_vm7 = vcmp.eq.f32.partialorder %v1913_v60, inf  ;;  %v815_v52 = vand.u32 2147483648, %v1913_v60 }
 0x104   : > { %v1029_v2 = vsel %vm1028_vm1, %v700_v27, %v1027_v61  ;;  %v795_v3 = vmul.f32 %v1557_v58, %v794_v62  ;;  %v651_v4 = vpop.f32.mrf.mxu3  ;;  %vm814_vm8 = vcmp.eq.f32.partialorder %v1913_v60, 0.0 }
 0x105   : > { %v787_v5 = vmul.f32 %v786_v63, %v765_v30  ;;  %v1032_v6 = vsel %vm1030_vm2, %v1031_v0, %v1029_v2  ;;  %v652_v7 = vadd.f32 %v651_v4, %v562_v1  ;;  %v525_v8 = vpop.f32.mrf.mxu0 }
 0x106   : > { %v1033_v10 = vadd.f32 1e-20, %v1032_v6  ;;  %v796_v11 = vmul.f32 0.5, %v795_v3  ;;  %v614_v12 = vpop.f32.mrf.mxu1 }
 0x107   : > { %v789_v13 = vsel %vm788_vm3, %v765_v30, %v787_v5  ;;  %v703_v15 = vmul.f32 %v652_v7, %v652_v7  ;;  %v615_v16 = vadd.f32 %v614_v12, %v525_v8 }
 0x108   : > { %v792_v17 = vsel %vm790_vm4, %v791_v9, %v789_v13  ;;  %1560 = vlog2.f32 %v1033_v10  ;;  %v797_v19 = vsub.f32 1.5, %v796_v11 }
 0x109   : > { %v1559_v20 = vpop.eup %1558  ;;  %v973_v21 = vadd.f32 1e-20, %v792_v17  ;;  %v1917_v22 = vadd.f32 %v703_v15, %v687_v14  ;;  %v688_v30 = vmul.f32 %v615_v16, %v615_v16 }
 0x10a   : > { %v798_v23 = vmul.f32 %v1557_v58, %v797_v19  ;;  %v806_v24 = vmul.f32 %v1559_v20, %v1913_v60 }
 0x10b   : > { %1562 = vlog2.f32 %v973_v21  ;;  %v565_v25 = vpop.f32.mrf.mxu2  ;;  %vm824_vm9 = vcmp.eq.f32.partialorder %v1917_v22, inf  ;;  %v827_v14 = vand.u32 2147483648, %v1917_v22  ;;  %vm826_vm10 = vcmp.eq.f32.partialorder %v1917_v22, 0.0 }
 0x10c   : > { %v799_v26 = vmul.f32 %v798_v23, %v1910_v41  ;;  %v807_v27 = vmul.f32 %v1559_v20, %v806_v24  ;;  %1564 = vrsqrt.f32 %v1917_v22  ;;  %v654_v28 = vpop.f32.mrf.mxu3 }
 0x10d   : > { %v655_v31 = vadd.f32 %v654_v28, %v565_v25  ;;  %v527_v32 = vpop.f32.mrf.mxu0 }
 0x10e   : > { %v1561_v33 = vpop.eup %1560  ;;  %v801_v34 = vsel %vm800_vm5, %v1910_v41, %v799_v26  ;;  %v808_v35 = vmul.f32 0.5, %v807_v27  ;;  %v616_v36 = vpop.f32.mrf.mxu1 }
 0x10f   : > { %v1926_v37 = vmul.f32 0.6931472, %v1561_v33  ;;  %v804_v38 = vsel %vm802_vm6, %v803_v29, %v801_v34  ;;  %v704_v39 = vmul.f32 %v655_v31, %v655_v31  ;;  %v617_v40 = vadd.f32 %v616_v36, %v527_v32 }
 0x110   : > { %v974_v42 = vadd.f32 1e-20, %v804_v38  ;;  %v809_v43 = vsub.f32 1.5, %v808_v35 }
 0x111   : > { %v1563_v44 = vpop.eup %1562  ;;  %v1928_v45 = vadd.f32 %v704_v39, %v688_v30  ;;  %v689_v57 = vmul.f32 %v617_v40, %v617_v40 }
 0x112   : > { %v1565_v46 = vpop.eup %1564  ;;  %v1930_v47 = vmul.f32 0.6931472, %v1563_v44  ;;  %1566 = vlog2.f32 %v974_v42  ;;  %v810_v48 = vmul.f32 %v1559_v20, %v809_v43 }
 0x113   : > { %v818_v49 = vmul.f32 %v1565_v46, %v1917_v22  ;;  %1568 = vrsqrt.f32 %v1928_v45  ;;  %v567_v41 = vpop.f32.mrf.mxu2  ;;  %vm836_vm11 = vcmp.eq.f32.partialorder %v1928_v45, inf  ;;  %v839_v34 = vand.u32 2147483648, %v1928_v45 }
 0x114   : > { %v811_v50 = vmul.f32 %v810_v48, %v1913_v60  ;;  %v656_v51 = vpop.f32.mrf.mxu3  ;;  %vm838_vm12 = vcmp.eq.f32.partialorder %v1928_v45, 0.0 }
 0x115   : > { %v819_v53 = vmul.f32 %v1565_v46, %v818_v49  ;;  %v657_v54 = vadd.f32 %v656_v51, %v567_v41  ;;  %v530_v55 = vpop.f32.mrf.mxu0 }
 0x116   : > { %v813_v56 = vsel %vm812_vm7, %v1913_v60, %v811_v50  ;;  %v619_v58 = vpop.f32.mrf.mxu1 }
 0x117   : > { %v816_v59 = vsel %vm814_vm8, %v815_v52, %v813_v56  ;;  %v820_v61 = vmul.f32 0.5, %v819_v53  ;;  %v705_v62 = vmul.f32 %v657_v54, %v657_v54  ;;  %v620_v63 = vadd.f32 %v619_v58, %v530_v55 }
 0x118   : > { %v1567_v0 = vpop.eup %1566  ;;  %v975_v1 = vadd.f32 1e-20, %v816_v59 }
 0x119   : > { %v1569_v2 = vpop.eup %1568  ;;  %v1939_v3 = vmul.f32 0.6931472, %v1567_v0  ;;  %v821_v4 = vsub.f32 1.5, %v820_v61  ;;  %v1941_v5 = vadd.f32 %v705_v62, %v689_v57  ;;  %v690_v11 = vmul.f32 %v620_v63, %v620_v63 }
 0x11a   : > { %1570 = vlog2.f32 %v975_v1  ;;  %v830_v6 = vmul.f32 %v1569_v2, %v1928_v45 }
 0x11b   : > { %v822_v7 = vmul.f32 %v1565_v46, %v821_v4  ;;  %1572 = vrsqrt.f32 %v1941_v5  ;;  %v570_v60 = vpop.f32.mrf.mxu2  ;;  %vm848_vm13 = vcmp.eq.f32.partialorder %v1941_v5, inf  ;;  %v851_v57 = vand.u32 2147483648, %v1941_v5 }
 0x11c   : > { %v831_v8 = vmul.f32 %v1569_v2, %v830_v6  ;;  %v659_v9 = vpop.f32.mrf.mxu3  ;;  %vm850_vm14 = vcmp.eq.f32.partialorder %v1941_v5, 0.0 }
 0x11d   : > { %v823_v10 = vmul.f32 %v822_v7, %v1917_v22  ;;  %v660_v12 = vadd.f32 %v659_v9, %v570_v60  ;;  %v532_v13 = vpop.f32.mrf.mxu0 }
 0x11e   : > { %v832_v15 = vmul.f32 0.5, %v831_v8  ;;  %v621_v16 = vpop.f32.mrf.mxu1 }
 0x11f   : > { %v825_v17 = vsel %vm824_vm9, %v1917_v22, %v823_v10  ;;  %v706_v19 = vmul.f32 %v660_v12, %v660_v12  ;;  %v622_v20 = vadd.f32 %v621_v16, %v532_v13 }
 0x120   : > { %v1571_v21 = vpop.eup %1570  ;;  %v828_v23 = vsel %vm826_vm10, %v827_v14, %v825_v17  ;;  %v833_v24 = vsub.f32 1.5, %v832_v15 }
 0x121   : > { %v1573_v25 = vpop.eup %1572  ;;  %v1950_v26 = vmul.f32 0.6931472, %v1571_v21  ;;  %v976_v27 = vadd.f32 1e-20, %v828_v23  ;;  %v1952_v28 = vadd.f32 %v706_v19, %v690_v11  ;;  %v691_v43 = vmul.f32 %v622_v20, %v622_v20 }
 0x122   : > { %v834_v29 = vmul.f32 %v1569_v2, %v833_v24  ;;  %v842_v30 = vmul.f32 %v1573_v25, %v1941_v5 }
 0x123   : > { %1574 = vlog2.f32 %v976_v27  ;;  %v572_v31 = vpop.f32.mrf.mxu2  ;;  %vm860_vm15 = vcmp.eq.f32.partialorder %v1952_v28, inf  ;;  %v863_v20 = vand.u32 2147483648, %v1952_v28  ;;  %vm862_vm0 = vcmp.eq.f32.partialorder %v1952_v28, 0.0 }
 0x124   : > { %v835_v32 = vmul.f32 %v834_v29, %v1928_v45  ;;  %v843_v33 = vmul.f32 %v1573_v25, %v842_v30  ;;  %1576 = vrsqrt.f32 %v1952_v28  ;;  %v661_v22 = vpop.f32.mrf.mxu3 }
 0x125   : > { %v662_v35 = vadd.f32 %v661_v22, %v572_v31  ;;  %v535_v36 = vpop.f32.mrf.mxu0 }
 0x126   : > { %v837_v38 = vsel %vm836_vm11, %v1928_v45, %v835_v32  ;;  %v844_v39 = vmul.f32 0.5, %v843_v33  ;;  %v624_v40 = vpop.f32.mrf.mxu1 }
 0x127   : > { %v840_v42 = vsel %vm838_vm12, %v839_v34, %v837_v38  ;;  %v707_v44 = vmul.f32 %v662_v35, %v662_v35  ;;  %v625_v50 = vadd.f32 %v624_v40, %v535_v36 }
 0x128   : > { %v977_v46 = vadd.f32 1e-20, %v840_v42  ;;  %v845_v48 = vsub.f32 1.5, %v844_v39 }
 0x129   : > { %v1575_v49 = vpop.eup %1574  ;;  %v1961_v41 = vadd.f32 %v707_v44, %v691_v43  ;;  %v692_v59 = vmul.f32 %v625_v50, %v625_v50 }
 0x12a   : > { %v1577_v51 = vpop.eup %1576  ;;  %v1963_v52 = vmul.f32 0.6931472, %v1575_v49  ;;  %1578 = vlog2.f32 %v977_v46  ;;  %v846_v53 = vmul.f32 %v1573_v25, %v845_v48 }
 0x12b   : > { %v854_v54 = vmul.f32 %v1577_v51, %v1952_v28  ;;  %1580 = vrsqrt.f32 %v1961_v41  ;;  %v575_v45 = vpop.f32.mrf.mxu2  ;;  %vm872_vm1 = vcmp.eq.f32.partialorder %v1961_v41, inf  ;;  %v875_v43 = vand.u32 2147483648, %v1961_v41 }
 0x12c   : > { %v847_v55 = vmul.f32 %v846_v53, %v1941_v5  ;;  %v664_v56 = vpop.f32.mrf.mxu3  ;;  %vm874_vm2 = vcmp.eq.f32.partialorder %v1961_v41, 0.0 }
 0x12d   : > { %v855_v58 = vmul.f32 %v1577_v51, %v854_v54  ;;  %v665_v61 = vadd.f32 %v664_v56, %v575_v45  ;;  %v537_v62 = vpop.f32.mrf.mxu0 }
 0x12e   : > { %v849_v63 = vsel %vm848_vm13, %v1941_v5, %v847_v55  ;;  %v626_v0 = vpop.f32.mrf.mxu1 }
 0x12f   : > { %v852_v1 = vsel %vm850_vm14, %v851_v57, %v849_v63  ;;  %v856_v2 = vmul.f32 0.5, %v855_v58  ;;  %v708_v4 = vmul.f32 %v665_v61, %v665_v61  ;;  %v627_v13 = vadd.f32 %v626_v0, %v537_v62 }
 0x130   : > { %v1579_v6 = vpop.eup %1578  ;;  %v978_v7 = vadd.f32 1e-20, %v852_v1 }
 0x131   : > { %v1581_v60 = vpop.eup %1580  ;;  %v1972_v8 = vmul.f32 0.6931472, %v1579_v6  ;;  %v857_v9 = vsub.f32 1.5, %v856_v2  ;;  %v1974_v10 = vadd.f32 %v708_v4, %v692_v59  ;;  %v693_v25 = vmul.f32 %v627_v13, %v627_v13 }
 0x132   : > { %1582 = vlog2.f32 %v978_v7  ;;  %v866_v11 = vmul.f32 %v1581_v60, %v1961_v41 }
 0x133   : > { %v858_v12 = vmul.f32 %v1577_v51, %v857_v9  ;;  %1584 = vrsqrt.f32 %v1974_v10  ;;  %v577_v5 = vpop.f32.mrf.mxu2  ;;  %vm884_vm3 = vcmp.eq.f32.partialorder %v1974_v10, inf  ;;  %v887_v2 = vand.u32 2147483648, %v1974_v10 }
 0x134   : > { %v867_v14 = vmul.f32 %v1581_v60, %v866_v11  ;;  %v666_v15 = vpop.f32.mrf.mxu3  ;;  %vm886_vm4 = vcmp.eq.f32.partialorder %v1974_v10, 0.0 }
 0x135   : > { %v859_v16 = vmul.f32 %v858_v12, %v1952_v28  ;;  %v667_v17 = vadd.f32 %v666_v15, %v577_v5  ;;  %v540_v19 = vpop.f32.mrf.mxu0 }
 0x136   : > { %v868_v21 = vmul.f32 0.5, %v867_v14  ;;  %v629_v23 = vpop.f32.mrf.mxu1 }
 0x137   : > { %v861_v24 = vsel %vm860_vm15, %v1952_v28, %v859_v16  ;;  %v709_v27 = vmul.f32 %v667_v17, %v667_v17  ;;  %v630_v35 = vadd.f32 %v629_v23, %v540_v19 }
 0x138   : > { %v1583_v29 = vpop.eup %1582  ;;  %v864_v30 = vsel %vm862_vm0, %v863_v20, %v861_v24  ;;  %v869_v31 = vsub.f32 1.5, %v868_v21 }
 0x139   : > { %v1585_v32 = vpop.eup %1584  ;;  %v1983_v33 = vmul.f32 0.6931472, %v1583_v29  ;;  %v979_v22 = vadd.f32 1e-20, %v864_v30  ;;  %v1985_v34 = vadd.f32 %v709_v27, %v693_v25  ;;  %v694_v44 = vmul.f32 %v630_v35, %v630_v35 }
 0x13a   : > { %v870_v36 = vmul.f32 %v1581_v60, %v869_v31  ;;  %v878_v38 = vmul.f32 %v1585_v32, %v1974_v10 }
 0x13b   : > { %1586 = vlog2.f32 %v979_v22  ;;  %v580_v39 = vpop.f32.mrf.mxu2  ;;  %vm896_vm5 = vcmp.eq.f32.partialorder %v1985_v34, inf  ;;  %v899_v22 = vand.u32 2147483648, %v1985_v34  ;;  %vm898_vm6 = vcmp.eq.f32.partialorder %v1985_v34, 0.0 }
 0x13c   : > { %v871_v40 = vmul.f32 %v870_v36, %v1961_v41  ;;  %v879_v28 = vmul.f32 %v1585_v32, %v878_v38  ;;  %1588 = vrsqrt.f32 %v1985_v34  ;;  %v669_v42 = vpop.f32.mrf.mxu3 }
 0x13d   : > { %v670_v46 = vadd.f32 %v669_v42, %v580_v39  ;;  %v542_v48 = vpop.f32.mrf.mxu0 }
 0x13e   : > { %v873_v49 = vsel %vm872_vm1, %v1961_v41, %v871_v40  ;;  %v880_v50 = vmul.f32 0.5, %v879_v28  ;;  %v631_v51 = vpop.f32.mrf.mxu1 }
 0x13f   : > { %v876_v53 = vsel %vm874_vm2, %v875_v43, %v873_v49  ;;  %v710_v54 = vmul.f32 %v670_v46, %v670_v46  ;;  %v632_v63 = vadd.f32 %v631_v51, %v542_v48 }
 0x140   : > { %v980_v45 = vadd.f32 1e-20, %v876_v53  ;;  %v881_v55 = vsub.f32 1.5, %v880_v50 }
 0x141   : > { %v1587_v56 = vpop.eup %1586  ;;  %v1994_v57 = vadd.f32 %v710_v54, %v694_v44  ;;  %v695_v13 = vmul.f32 %v632_v63, %v632_v63 }
 0x142   : > { %v1589_v58 = vpop.eup %1588  ;;  %v1996_v59 = vmul.f32 0.6931472, %v1587_v56  ;;  %1590 = vlog2.f32 %v980_v45  ;;  %v882_v61 = vmul.f32 %v1585_v32, %v881_v55 }
 0x143   : > { %v890_v62 = vmul.f32 %v1589_v58, %v1985_v34  ;;  %1592 = vrsqrt.f32 %v1994_v57  ;;  %v582_v41 = vpop.f32.mrf.mxu2  ;;  %vm908_vm7 = vcmp.eq.f32.partialorder %v1994_v57, inf  ;;  %v911_v55 = vand.u32 2147483648, %v1994_v57 }
 0x144   : > { %v883_v0 = vmul.f32 %v882_v61, %v1974_v10  ;;  %v671_v1 = vpop.f32.mrf.mxu3  ;;  %vm910_vm8 = vcmp.eq.f32.partialorder %v1994_v57, 0.0 }
 0x145   : > { %v891_v4 = vmul.f32 %v1589_v58, %v890_v62  ;;  %v672_v6 = vadd.f32 %v671_v1, %v582_v41  ;;  %v545_v7 = vpop.f32.mrf.mxu0 }
 0x146   : > { %v885_v60 = vsel %vm884_vm3, %v1974_v10, %v883_v0  ;;  %v634_v9 = vpop.f32.mrf.mxu1 }
 0x147   : > { %v888_v11 = vsel %vm886_vm4, %v887_v2, %v885_v60  ;;  %v892_v12 = vmul.f32 0.5, %v891_v4  ;;  %v711_v5 = vmul.f32 %v672_v6, %v672_v6  ;;  %v635_v21 = vadd.f32 %v634_v9, %v545_v7 }
 0x148   : > { %v1591_v14 = vpop.eup %1590  ;;  %v981_v15 = vadd.f32 1e-20, %v888_v11 }
 0x149   : > { %v1593_v16 = vpop.eup %1592  ;;  %v2005_v17 = vmul.f32 0.6931472, %v1591_v14  ;;  %v893_v19 = vsub.f32 1.5, %v892_v12  ;;  %v2007_v20 = vadd.f32 %v711_v5, %v695_v13  ;;  %v696_v30 = vmul.f32 %v635_v21, %v635_v21 }
 0x14a   : > { %1594 = vlog2.f32 %v981_v15  ;;  %v902_v23 = vmul.f32 %v1593_v16, %v1994_v57 }
 0x14b   : > { %v894_v24 = vmul.f32 %v1589_v58, %v893_v19  ;;  %1596 = vrsqrt.f32 %v2007_v20  ;;  %v585_v10 = vpop.f32.mrf.mxu2  ;;  %vm920_vm9 = vcmp.eq.f32.partialorder %v2007_v20, inf  ;;  %v923_v15 = vand.u32 2147483648, %v2007_v20 }
 0x14c   : > { %v903_v25 = vmul.f32 %v1593_v16, %v902_v23  ;;  %v674_v27 = vpop.f32.mrf.mxu3  ;;  %vm922_vm10 = vcmp.eq.f32.partialorder %v2007_v20, 0.0 }
 0x14d   : > { %v895_v29 = vmul.f32 %v894_v24, %v1985_v34  ;;  %v675_v31 = vadd.f32 %v674_v27, %v585_v10  ;;  %v547_v32 = vpop.f32.mrf.mxu0 }
 0x14e   : > { %v904_v35 = vmul.f32 0.5, %v903_v25  ;;  %v636_v36 = vpop.f32.mrf.mxu1 }
 0x14f   : > { %v897_v38 = vsel %vm896_vm5, %v1985_v34, %v895_v29  ;;  %v712_v39 = vmul.f32 %v675_v31, %v675_v31  ;;  %v637_v51 = vadd.f32 %v636_v36, %v547_v32 }
 0x150   : > { %v1595_v40 = vpop.eup %1594  ;;  %v900_v28 = vsel %vm898_vm6, %v899_v22, %v897_v38  ;;  %v905_v42 = vsub.f32 1.5, %v904_v35 }
 0x151   : > { %v1597_v43 = vpop.eup %1596  ;;  %v2016_v44 = vmul.f32 0.6931472, %v1595_v40  ;;  %v982_v46 = vadd.f32 1e-20, %v900_v28  ;;  %v2018_v48 = vadd.f32 %v712_v39, %v696_v30  ;;  %v697_v0 = vmul.f32 %v637_v51, %v637_v51 }
 0x152   : > { %v906_v49 = vmul.f32 %v1593_v16, %v905_v42  ;;  %v914_v50 = vmul.f32 %v1597_v43, %v2007_v20 }
 0x153   : > { %1598 = vlog2.f32 %v982_v46  ;;  %v587_v53 = vpop.f32.mrf.mxu2  ;;  %vm932_vm11 = vcmp.eq.f32.partialorder %v2018_v48, inf  ;;  %vm934_vm12 = vcmp.eq.f32.partialorder %v2018_v48, 0.0 }
 0x154   : > { %v907_v54 = vmul.f32 %v906_v49, %v1994_v57  ;;  %v915_v45 = vmul.f32 %v1597_v43, %v914_v50  ;;  %1600 = vrsqrt.f32 %v2018_v48  ;;  %v676_v34 = vpop.f32.mrf.mxu3  ;;  %v935_v49 = vand.u32 2147483648, %v2018_v48 }
 0x155   : > { %v677_v56 = vadd.f32 %v676_v34, %v587_v53  ;;  %v550_v62 = vpop.f32.mrf.mxu0 }
 0x156   : > { %v909_v58 = vsel %vm908_vm7, %v1994_v57, %v907_v54  ;;  %v916_v61 = vmul.f32 0.5, %v915_v45  ;;  %v639_v63 = vpop.f32.mrf.mxu1 }
 0x157   : > { %v912_v41 = vsel %vm910_vm8, %v911_v55, %v909_v58  ;;  %v713_v1 = vmul.f32 %v677_v56, %v677_v56  ;;  %v640_v60 = vadd.f32 %v639_v63, %v550_v62 }
 0x158   : > { %v983_v2 = vadd.f32 1e-20, %v912_v41  ;;  %v917_v4 = vsub.f32 1.5, %v916_v61 }
 0x159   : > { %v1599_v6 = vpop.eup %1598  ;;  %v2027_v7 = vadd.f32 %v713_v1, %v697_v0  ;;  %v698_v19 = vmul.f32 %v640_v60, %v640_v60 }
 0x15a   : > { %v1601_v9 = vpop.eup %1600  ;;  %v2029_v11 = vmul.f32 0.6931472, %v1599_v6  ;;  %1602 = vlog2.f32 %v983_v2  ;;  %v918_v12 = vmul.f32 %v1597_v43, %v917_v4 }
 0x15b   : > { %v926_v13 = vmul.f32 %v1601_v9, %v2018_v48  ;;  %1604 = vrsqrt.f32 %v2027_v7  ;;  %v590_v57 = vpop.f32.mrf.mxu2  ;;  %vm944_vm13 = vcmp.eq.f32.partialorder %v2027_v7, inf  ;;  %vm946_vm14 = vcmp.eq.f32.partialorder %v2027_v7, 0.0 }
 0x15c   : > { %v919_v5 = vmul.f32 %v918_v12, %v2007_v20  ;;  %v679_v14 = vpop.f32.mrf.mxu3 }
 0x15d   : > { %v927_v16 = vmul.f32 %v1601_v9, %v926_v13  ;;  %v680_v21 = vadd.f32 %v679_v14, %v590_v57  ;;  %v552_v30 = vpop.f32.mrf.mxu0 }
 0x15e   : > { %v921_v23 = vsel %vm920_vm9, %v2007_v20, %v919_v5  ;;  %v641_v31 = vpop.f32.mrf.mxu1 }
 0x15f   : > { %v924_v24 = vsel %vm922_vm10, %v923_v15, %v921_v23  ;;  %v928_v10 = vmul.f32 0.5, %v927_v16  ;;  %v714_v25 = vmul.f32 %v680_v21, %v680_v21  ;;  %v642_v40 = vadd.f32 %v641_v31, %v552_v30 }
 0x160   : > { %v1603_v27 = vpop.eup %1602  ;;  %v984_v29 = vadd.f32 1e-20, %v924_v24 }
 0x161   : > { %v1605_v32 = vpop.eup %1604  ;;  %v2038_v22 = vmul.f32 0.6931472, %v1603_v27  ;;  %v929_v35 = vsub.f32 1.5, %v928_v10  ;;  %v779_v36 = vadd.f32 %v714_v25, %v698_v19  ;;  %v699_v53 = vmul.f32 %v642_v40, %v642_v40 }
 0x162   : > { %1606 = vlog2.f32 %v984_v29  ;;  %v938_v38 = vmul.f32 %v1605_v32, %v2027_v7 }
 0x163   : > { %v930_v39 = vmul.f32 %v1601_v9, %v929_v35  ;;  %1608 = vrsqrt.f32 %v779_v36  ;;  %v592_v28 = vpop.f32.mrf.mxu2  ;;  %vm956_vm15 = vcmp.eq.f32.partialorder %v779_v36, inf  ;;  %v959_v16 = vand.u32 2147483648, %v779_v36 }
 0x164   : > { %v939_v20 = vmul.f32 %v1605_v32, %v938_v38  ;;  %v681_v42 = vpop.f32.mrf.mxu3  ;;  %vm958_vm0 = vcmp.eq.f32.partialorder %v779_v36, 0.0 }
 0x165   : > { %v931_v43 = vmul.f32 %v930_v39, %v2018_v48  ;;  %v682_v46 = vadd.f32 %v681_v42, %v592_v28 }
 0x166   : > { %v940_v50 = vmul.f32 0.5, %v939_v20 }
 0x167   : > { %v933_v51 = vsel %vm932_vm11, %v2018_v48, %v931_v43  ;;  %v715_v54 = vmul.f32 %v682_v46, %v682_v46  ;;  %v947_v48 = vand.u32 2147483648, %v2027_v7 }
 0x168   : > { %v1607_v45 = vpop.eup %1606  ;;  %v936_v34 = vsel %vm934_vm12, %v935_v49, %v933_v51  ;;  %v941_v55 = vsub.f32 1.5, %v940_v50 }
 0x169   : > { %v1609_v56 = vpop.eup %1608  ;;  %v2046_v58 = vmul.f32 0.6931472, %v1607_v45  ;;  %v985_v61 = vadd.f32 1e-20, %v936_v34  ;;  %v780_v62 = vadd.f32 %v715_v54, %v699_v53 }
 0x16a   : > { %v942_v63 = vmul.f32 %v1605_v32, %v941_v55  ;;  %v950_v41 = vmul.f32 %v1609_v56, %v779_v36 }
 0x16b   : > { %1610 = vlog2.f32 %v985_v61  ;;  %vm968_vm1 = vcmp.eq.f32.partialorder %v780_v62, inf  ;;  %v971_v31 = vand.u32 2147483648, %v780_v62  ;;  %vm970_vm2 = vcmp.eq.f32.partialorder %v780_v62, 0.0 }
 0x16c   : > { %v943_v0 = vmul.f32 %v942_v63, %v2027_v7  ;;  %v951_v1 = vmul.f32 %v1609_v56, %v950_v41  ;;  %1612 = vrsqrt.f32 %v780_v62 }
 0x16e   : > { %v945_v2 = vsel %vm944_vm13, %v2027_v7, %v943_v0  ;;  %v952_v4 = vmul.f32 0.5, %v951_v1 }
 0x16f   : > { %v948_v6 = vsel %vm946_vm14, %v947_v48, %v945_v2 }
 0x170   : > { %v986_v60 = vadd.f32 1e-20, %v948_v6  ;;  %v953_v9 = vsub.f32 1.5, %v952_v4 }
 0x171   : > { %v1611_v12 = vpop.eup %1610 }
 0x172   : > { %v1613_v13 = vpop.eup %1612  ;;  %v2053_v57 = vmul.f32 0.6931472, %v1611_v12  ;;  %1614 = vlog2.f32 %v986_v60  ;;  %v954_v5 = vmul.f32 %v1609_v56, %v953_v9 }
 0x173   : > { %v962_v14 = vmul.f32 %v1613_v13, %v780_v62 }
 0x174   : > { %v955_v15 = vmul.f32 %v954_v5, %v779_v36 }
 0x175   : > { %v963_v19 = vmul.f32 %v1613_v13, %v962_v14 }
 0x176   : > { %v957_v21 = vsel %vm956_vm15, %v779_v36, %v955_v15 }
 0x177   : > { %v960_v23 = vsel %vm958_vm0, %v959_v16, %v957_v21  ;;  %v964_v24 = vmul.f32 0.5, %v963_v19 }
 0x178   : > { %v1615_v7 = vpop.eup %1614  ;;  %v987_v10 = vadd.f32 1e-20, %v960_v23 }
 0x179   : > { %v2055_v25 = vmul.f32 0.6931472, %v1615_v7  ;;  %v965_v27 = vsub.f32 1.5, %v964_v24 }
 0x17a   : > { %1616 = vlog2.f32 %v987_v10 }
 0x17b   : > { %v966_v29 = vmul.f32 %v1613_v13, %v965_v27 }
 0x17d   : > { %v967_v30 = vmul.f32 %v966_v29, %v780_v62 }
 0x17f   : > { %v969_v32 = vsel %vm968_vm1, %v780_v62, %v967_v30 }
 0x180   : > { %v1617_v35 = vpop.eup %1616  ;;  %v972_v38 = vsel %vm970_vm2, %v971_v31, %v969_v32 }
 0x181   : > { %v1018_v39 = vmul.f32 0.6931472, %v1617_v35  ;;  %v988_v40 = vadd.f32 1e-20, %v972_v38 }
 0x183   : > { %1618 = vlog2.f32 %v988_v40 }
 0x186   : > { %1042 = sbr.rel (%p1413_p1) target bundleno = 412 (0x19c), region = 40 }
 0x189   : > { %v1619_v36 = vpop.eup %1618 }
 0x18a   : > { %v1020_v28 = vmul.f32 0.6931472, %v1619_v36 }
 0x18b   : > { %1043 = vst [vmem:[%s1875_s22] sm:$0xff] %v1930_v47 }
 0x18c   : > { %1044 = vst [vmem:[%s1875_s22 + $0x8] sm:$0xff] %v1939_v3 }
 0x18d   : > { %1045 = vst [vmem:[%s1875_s22 + $0x10] sm:$0xff] %v1950_v26 }
 0x18e   : > { %1046 = vst [vmem:[%s1875_s22 + $0x18] sm:$0xff] %v1963_v52 }
 0x18f   : > { %1047 = vst [vmem:[%s1875_s22 + $0x20] sm:$0xff] %v1972_v8 }
 0x190   : > { %1048 = vst [vmem:[%s1875_s22 + $0x28] sm:$0xff] %v1983_v33 }
 0x191   : > { %1049 = vst [vmem:[%s1875_s22 + $0x30] sm:$0xff] %v1996_v59 }
 0x192   : > { %1050 = vst [vmem:[%s1875_s22 + $0x38] sm:$0xff] %v2005_v17 }
 0x193   : > { %1051 = vst [vmem:[%s1875_s22 + $0x40] sm:$0xff] %v2016_v44 }
 0x194   : > { %1052 = vst [vmem:[%s1875_s22 + $0x48] sm:$0xff] %v2029_v11 }
 0x195   : > { %1053 = vst [vmem:[%s1875_s22 + $0x50] sm:$0xff] %v2038_v22 }
 0x196   : > { %1054 = vst [vmem:[%s1875_s22 + $0x58] sm:$0xff] %v2046_v58 }
 0x197   : > { %1055 = vst [vmem:[%s1875_s22 + $0x60] sm:$0xff] %v2053_v57 }
 0x198   : > { %1056 = vst [vmem:[%s1875_s22 + $0x68] sm:$0xff] %v2055_v25 }
 0x199   : > { %1057 = vst [vmem:[%s1875_s22 + $0x70] sm:$0xff] %v1018_v39 }
 0x19a   : > { %1058 = vst [vmem:[%s1875_s22 + $0x78] sm:$0xff] %v1020_v28 }
 0x19b   : > { %1059 = vst [vmem:[%s1875_s22 + $0x80] sm:$0x1] %v1926_v37 }
 0x19c PF: > { %p1414_p3 = scmp.ge.s32.totalorder %s1869_s27, 128 }
 0x19e   : > { %1063 = sbr.rel (%p1414_p3) target bundleno = 440 (0x1b8), region = 44 }
 0x1a3   : > { %v1066_v20 = vand.u32 127, %v716_v18  ;;  %v1069_v42 = vstv %s1869_s27 }
 0x1a5   : > { %vm2093_vm3 = vcmp.lt.s32.totalorder %v1066_v20, %v1069_v42 }
 0x1a6   : > { %v1073_v46 = vsel %vm2093_vm3, %v1930_v47, 0.0  ;;  %v1074_v49 = vsel %vm2093_vm3, %v1939_v3, 0.0  ;;  %v1075_v18 = vsel %vm2093_vm3, %v1950_v26, 0.0  ;;  %v1076_v50 = vsel %vm2093_vm3, %v1963_v52, 0.0 }
 0x1a7   : > { %1089 = vst [vmem:[%s1875_s22] sm:$0xff] %v1073_v46  ;;  %v1077_v47 = vsel %vm2093_vm3, %v1972_v8, 0.0  ;;  %v1078_v3 = vsel %vm2093_vm3, %v1983_v33, 0.0  ;;  %v1079_v26 = vsel %vm2093_vm3, %v1996_v59, 0.0  ;;  %v1080_v52 = vsel %vm2093_vm3, %v2005_v17, 0.0 }
 0x1a8   : > { %1090 = vst [vmem:[%s1875_s22 + $0x8] sm:$0xff] %v1074_v49  ;;  %v1081_v8 = vsel %vm2093_vm3, %v2016_v44, 0.0  ;;  %v1082_v33 = vsel %vm2093_vm3, %v2029_v11, 0.0  ;;  %v1083_v59 = vsel %vm2093_vm3, %v2038_v22, 0.0  ;;  %v1084_v17 = vsel %vm2093_vm3, %v2046_v58, 0.0 }
 0x1a9   : > { %1091 = vst [vmem:[%s1875_s22 + $0x10] sm:$0xff] %v1075_v18  ;;  %v1085_v44 = vsel %vm2093_vm3, %v2053_v57, 0.0  ;;  %v1086_v11 = vsel %vm2093_vm3, %v2055_v25, 0.0  ;;  %v1087_v51 = vsel %vm2093_vm3, %v1018_v39, 0.0  ;;  %v1088_v22 = vsel %vm2093_vm3, %v1020_v28, 0.0 }
 0x1aa   : > { %1092 = vst [vmem:[%s1875_s22 + $0x18] sm:$0xff] %v1076_v50  ;;  %v1105_v53 = vsel %vm2093_vm3, %v1926_v37, 0.0 }
 0x1ab   : > { %1093 = vst [vmem:[%s1875_s22 + $0x20] sm:$0xff] %v1077_v47 }
 0x1ac   : > { %1094 = vst [vmem:[%s1875_s22 + $0x28] sm:$0xff] %v1078_v3 }
 0x1ad   : > { %1095 = vst [vmem:[%s1875_s22 + $0x30] sm:$0xff] %v1079_v26 }
 0x1ae   : > { %1096 = vst [vmem:[%s1875_s22 + $0x38] sm:$0xff] %v1080_v52 }
 0x1af   : > { %1097 = vst [vmem:[%s1875_s22 + $0x40] sm:$0xff] %v1081_v8 }
 0x1b0   : > { %1098 = vst [vmem:[%s1875_s22 + $0x48] sm:$0xff] %v1082_v33 }
 0x1b1   : > { %1099 = vst [vmem:[%s1875_s22 + $0x50] sm:$0xff] %v1083_v59 }
 0x1b2   : > { %1100 = vst [vmem:[%s1875_s22 + $0x58] sm:$0xff] %v1084_v17 }
 0x1b3   : > { %1101 = vst [vmem:[%s1875_s22 + $0x60] sm:$0xff] %v1085_v44 }
 0x1b4   : > { %1102 = vst [vmem:[%s1875_s22 + $0x68] sm:$0xff] %v1086_v11 }
 0x1b5   : > { %1103 = vst [vmem:[%s1875_s22 + $0x70] sm:$0xff] %v1087_v51 }
 0x1b6   : > { %1104 = vst [vmem:[%s1875_s22 + $0x78] sm:$0xff] %v1088_v22 }
 0x1b7   : > { %1106 = vst [vmem:[%s1875_s22 + $0x80] sm:$0x1] %v1105_v53 }
 0x1b8 PF: > { %s25_s0 = sadd.s32 1, %s1748_s0   ;;  %s2191_s16 = smov %s1732_s17 }
 0x1b9   : > { %p22_p4 = scmp.ge.s32.totalorder %s25_s0, 4   ;;  %s2192_s17 = smov %s1736_s18 }
 0x1ba   : > { %s2193_s18 = smov %s1847_s12  ;;  %s2194_s19 = smov %s1744_s20 }
 0x1bb   : > { %s2195_s20 = smov %s2197_s5  ;;  %24 = sbr.rel (!%p22_p4) target bundleno = 11 (0xb), region = 80 }
 0x1c0   :  { %1134 = vsyncpa [#allocation5], 1 }
 0x1c1   :  { %1136 = vsyncpa [#allocation5 + $0x1], 1 }
 0x1c2   :  { %1137 = vsyncpa [#allocation7], 1 }

</bundles_post_ra>
